<compile_context>
chip_gen: v7x
topology: tpu7x:2x2x1
jax: 0.10.0
libtpu: 0.0.40
codegen_flags: <defaults>
</compile_context>

<pallas_src>
import functools

import jax
import jax.numpy as jnp
from jax.experimental import pallas as pl
from jax.experimental.pallas import tpu as pltpu


def _round_up(x, m):
    return (x + m - 1) // m * m


def _vmem_limit_bytes():
    # Per-generation scoped-VMEM budget: ~3/4 of physical, capped at 96 MiB
    # (v5e/v6e: 128 MiB -> 96 MiB; v7x: 64 MiB -> 48 MiB).
    try:
        cap = int(pltpu.get_tpu_info().vmem_capacity_bytes)
    except Exception:
        cap = 64 * 1024 * 1024  # conservative fallback, safe on every generation
    return int(min(cap * 3 // 4, 96 * 1024 * 1024))


_VMEM_LIMIT = _vmem_limit_bytes()

_WOFF = 8  # sublane-aligned left halo width along W in the fused kernel's scratch


# ---------------------------------------------------------------------------
# conv1 (1x1x1) + bn1 + relu as a fused GEMM:  relu((X @ W) * s + b)
# ---------------------------------------------------------------------------
def _conv1_gemm_kernel(x_ref, w_ref, s_ref, b_ref, o_ref):
    acc = jnp.dot(x_ref[...], w_ref[...], preferred_element_type=jnp.float32)
    acc = acc * s_ref[...] + b_ref[...]          # BN in the f32 epilogue
    o_ref[...] = jnp.maximum(acc, 0.0).astype(o_ref.dtype)


def conv1x1_bn_relu(x2d, w, scale, bias, out_dtype=jnp.bfloat16, max_tm=1024):
    """x2d: (M, K) bf16 channels-last; w: (K, N) bf16; scale/bias: (N,) f32."""
    M, K = x2d.shape
    Nc = w.shape[1]
    # >= 2 parallel row tiles so both v7x TensorCores get work; otherwise the
    # largest row tile up to max_tm rows.
    n_tiles = max(2, pl.cdiv(M, max_tm))
    tm = _round_up(pl.cdiv(M, n_tiles), 8)
    Mp = _round_up(M, tm)
    if Mp != M:
        x2d = jnp.pad(x2d, ((0, Mp - M), (0, 0)))
    sr = scale.reshape(1, Nc).astype(jnp.float32)
    br = bias.reshape(1, Nc).astype(jnp.float32)

    out = pl.pallas_call(
        _conv1_gemm_kernel,
        out_shape=jax.ShapeDtypeStruct((Mp, Nc), out_dtype),
        grid_spec=pltpu.PrefetchScalarGridSpec(
            num_scalar_prefetch=0,
            grid=(Mp // tm,),
            in_specs=[
                pl.BlockSpec((tm, K), lambda i: (i, 0)),   # activation row tile
                pl.BlockSpec((K, Nc), lambda i: (0, 0)),   # weight (bf16)
                pl.BlockSpec((1, Nc), lambda i: (0, 0)),   # BN scale (f32)
                pl.BlockSpec((1, Nc), lambda i: (0, 0)),   # BN shift (f32)
            ],
            out_specs=pl.BlockSpec((tm, Nc), lambda i: (i, 0)),
        ),
        compiler_params=pltpu.CompilerParams(
            dimension_semantics=("parallel",),
            vmem_limit_bytes=_VMEM_LIMIT),
    )(x2d, w, sr, br)
    return out[:M] if Mp != M else out


# ---------------------------------------------------------------------------
# Fused conv2 (3x3x3, pad=1, stride=1) + bn2 + relu + conv3 (1x1x1) + bn3
#          + residual + relu.
# One grid step = one sample.  Output is channel-first (Cout, D*H*W), i.e.
# already in NCDHW order and lane-dense.
# ---------------------------------------------------------------------------
def _conv23_fused_kernel(h1_ref, res_ref, w2_ref, s2_ref, b2_ref,
                         w3_ref, s3_ref, b3_ref, o_ref, xp_ref, *, D, H, W):
    C = h1_ref.shape[-1]
    DHW = D * H * W

    # Build the D/H/W halo in VMEM (nothing is padded in HBM).  The interior
    # store is tile-aligned: D/H offsets are pure addressing, the W (sublane)
    # offset is _WOFF=8 (a whole sublane tile), the C (lane) axis is full.
    xp_ref[...] = jnp.zeros_like(xp_ref)
    x = h1_ref[0].reshape(D, H, W, C).astype(jnp.float32)
    xp_ref[pl.ds(1, D), pl.ds(1, H), pl.ds(_WOFF, W), :] = x
    xp = xp_ref[...]                                   # (D+2, H+2, WP, C) f32

    # im2col: 27 tap-shifted views stacked along the channel (lane) axis ->
    # a single K = 27*C GEMM instead of 27 K=C dots.
    pieces = []
    for kd in range(3):
        for kh in range(3):
            for kw in range(3):
                p = xp[kd:kd + D, kh:kh + H,
                       _WOFF - 1 + kw:_WOFF - 1 + kw + W, :]
                pieces.append(p.reshape(DHW, C))
    slab = jnp.concatenate(pieces, axis=-1).astype(jnp.bfloat16)   # (DHW, 27C)

    # conv2 + bn2 + relu  (BN applied on the f32 accumulator).
    acc2 = jnp.dot(slab, w2_ref[...], preferred_element_type=jnp.float32)
    h2 = jnp.maximum(acc2 * s2_ref[...] + b2_ref[...], 0.0)
    h2 = h2.astype(jnp.bfloat16)                                   # (DHW, Cmid)

    # conv3 + bn3 + residual + relu, produced channel-first:
    #   acc3[o, m] = sum_c w3[o, c] * h2[m, c]     (A @ B^T form on the MXU)
    acc3 = jax.lax.dot_general(
        w3_ref[...], h2, (((1,), (1,)), ((), ())),
        preferred_element_type=jnp.float32)                        # (Cout, DHW)
    y = acc3 * s3_ref[...] + b3_ref[...] + res_ref[0]              # f32 residual
    o_ref[0] = jnp.maximum(y, 0.0).astype(o_ref.dtype)


def conv2_conv3_residual(h1, res_f32, w2_taps, s2, b2, w3, s3, b3,
                         d, h, w, out_dtype=jnp.bfloat16):
    """h1: (N, D*H, W, Cmid) bf16 channels-last; res_f32: (N, Cout, D*H*W) f32;
    w2_taps: (27*Cmid, Cmid) bf16 tap-major (kd,kh,kw); w3: (Cout, Cmid) bf16.
    Returns (N, Cout, D*H*W) `out_dtype` (i.e. NCDHW order)."""
    n, dh, w_, cmid = h1.shape
    assert dh == d * h and w_ == w
    c_out = w3.shape[0]
    dhw = d * h * w
    wp = _round_up(_WOFF + w + 1, 8)

    s2r = s2.reshape(1, cmid).astype(jnp.float32)
    b2r = b2.reshape(1, cmid).astype(jnp.float32)
    s3r = s3.reshape(c_out, 1).astype(jnp.float32)
    b3r = b3.reshape(c_out, 1).astype(jnp.float32)

    kernel = functools.partial(_conv23_fused_kernel, D=d, H=h, W=w)
    return pl.pallas_call(
        kernel,
        out_shape=jax.ShapeDtypeStruct((n, c_out, dhw), out_dtype),
        grid_spec=pltpu.PrefetchScalarGridSpec(
            num_scalar_prefetch=0,
            grid=(n,),
            in_specs=[
                pl.BlockSpec((1, d * h, w, cmid), lambda i: (i, 0, 0, 0)),
                pl.BlockSpec((1, c_out, dhw), lambda i: (i, 0, 0)),
                pl.BlockSpec((27 * cmid, cmid), lambda i: (0, 0)),
                pl.BlockSpec((1, cmid), lambda i: (0, 0)),      # s2
                pl.BlockSpec((1, cmid), lambda i: (0, 0)),      # b2
                pl.BlockSpec((c_out, cmid), lambda i: (0, 0)),  # w3
                pl.BlockSpec((c_out, 1), lambda i: (0, 0)),     # s3
                pl.BlockSpec((c_out, 1), lambda i: (0, 0)),     # b3
            ],
            out_specs=pl.BlockSpec((1, c_out, dhw), lambda i: (i, 0, 0)),
            scratch_shapes=[pltpu.VMEM((d + 2, h + 2, wp, cmid), jnp.float32)],
        ),
        compiler_params=pltpu.CompilerParams(
            dimension_semantics=("parallel",),
            vmem_limit_bytes=_VMEM_LIMIT),
    )(h1, res_f32, w2_taps, s2r, b2r, w3, s3r, b3r)


# ---------------------------------------------------------------------------
# BN folding + the full Bottleneck forward
# ---------------------------------------------------------------------------
def _bn_fold(gamma, beta, mean, var, eps=1e-5):
    scale = gamma / jnp.sqrt(var + eps)
    return scale, beta - mean * scale


def bottleneck_forward(x_ncdhw, params):
    """Pallas implementation of Bottleneck.forward (stride=1, downsample=None)."""
    n, c_in, d, h, w = x_ncdhw.shape
    planes = params["w1_oidhw"].shape[0]
    c_out = params["w3_oidhw"].shape[0]
    assert c_out == c_in, "downsample=None requires inplanes == planes*expansion"
    dhw = d * h * w

    # conv1 (1x1x1) + bn1 + relu — channels-last fused GEMM (one entry transpose).
    x_cl = jnp.transpose(x_ncdhw, (0, 2, 3, 4, 1)).reshape(n * dhw, c_in)
    x_cl = x_cl.astype(jnp.bfloat16)
    s1, b1 = _bn_fold(*params["bn1"])
    w1 = params["w1_oidhw"].reshape(planes, c_in).T.astype(jnp.bfloat16)
    h1 = conv1x1_bn_relu(x_cl, w1, s1, b1)                 # (M, planes) bf16
    h1 = h1.reshape(n, d * h, w, planes)

    # conv2 + bn2 + relu + conv3 + bn3 + residual + relu — one fused kernel.
    s2, b2 = _bn_fold(*params["bn2"])
    w2 = jnp.transpose(params["w2_oidhw"], (2, 3, 4, 1, 0))     # (3,3,3,Cin,Cout)
    w2 = w2.reshape(27 * planes, planes).astype(jnp.bfloat16)
    s3, b3 = _bn_fold(*params["bn3"])
    w3 = params["w3_oidhw"].reshape(c_out, planes).astype(jnp.bfloat16)
    res = x_ncdhw.reshape(n, c_in, dhw).astype(jnp.float32)  # f32 residual, NCDHW

    out = conv2_conv3_residual(h1, res, w2, s2, b2, w3, s3, b3, d, h, w)
    # Output is already channel-first (NCDHW): only a metadata reshape + cast.
    return out.reshape(n, c_out, d, h, w).astype(jnp.float32)


# ---------------------------------------------------------------------------
# Pure-JAX f32 reference (NCDHW, PyTorch eval-mode semantics)
# ---------------------------------------------------------------------------
def bottleneck_reference(x, params):
    def conv(y, wt, pad):
        return jax.lax.conv_general_dilated(
            y, wt, window_strides=(1, 1, 1), padding=[(pad, pad)] * 3,
            dimension_numbers=("NCDHW", "OIDHW", "NCDHW"))

    def bn(y, stats):
        gamma, beta, mean, var = stats
        s = gamma / jnp.sqrt(var + 1e-5)
        b = beta - mean * s
        return y * s[None, :, None, None, None] + b[None, :, None, None, None]

    out = jax.nn.relu(bn(conv(x, params["w1_oidhw"], 0), params["bn1"]))
    out = jax.nn.relu(bn(conv(out, params["w2_oidhw"], 1), params["bn2"]))
    out = bn(conv(out, params["w3_oidhw"], 0), params["bn3"])
    return jax.nn.relu(out + x)


# ---------------------------------------------------------------------------
# Deterministic parameter construction + run
# ---------------------------------------------------------------------------
def make_params(key, inplanes, planes, expansion=4):
    keys = jax.random.split(key, 12)
    c_out = planes * expansion

    def bn_stats(k0, k1, k2, k3, c):
        gamma = jax.random.uniform(k0, (c,), jnp.float32, 0.5, 1.5)
        beta = jax.random.normal(k1, (c,), jnp.float32) * 0.1
        mean = jax.random.normal(k2, (c,), jnp.float32) * 0.1
        var = jax.random.uniform(k3, (c,), jnp.float32, 0.5, 1.5)
        return (gamma, beta, mean, var)

    return {
        "w1_oidhw": jax.random.normal(keys[0], (planes, inplanes, 1, 1, 1),
                                      jnp.float32) * 0.1,
        "w2_oidhw": jax.random.normal(keys[1], (planes, planes, 3, 3, 3),
                                      jnp.float32) * 0.1,
        "w3_oidhw": jax.random.normal(keys[2], (c_out, planes, 1, 1, 1),
                                      jnp.float32) * 0.1,
        "bn1": bn_stats(keys[3], keys[4], keys[5], keys[6], planes),
        "bn2": bn_stats(keys[7], keys[8], keys[9], keys[10], planes),
        "bn3": bn_stats(*jax.random.split(keys[11], 4), c_out),
    }


if __name__ == "__main__":
    key = jax.random.PRNGKey(0)
    k_x, k_p = jax.random.split(key)

    # inplanes = planes * expansion so the residual matches (downsample=None).
    batch, inplanes, planes = 2, 32, 8
    D, H, W = 4, 8, 8

    x = jax.random.normal(k_x, (batch, inplanes, D, H, W), jnp.float32)
    params = make_params(k_p, inplanes, planes)

    out = jax.block_until_ready(bottleneck_forward(x, params))

    ref = bottleneck_reference(x, params)
    assert out.shape == ref.shape == (batch, planes * 4, D, H, W)
    # bf16 operands + f32 accumulation (BN/residual in f32): loosened tolerance.
    assert jnp.allclose(out, ref, rtol=5e-2, atol=5e-2), "mismatch vs reference"

    print("KERNEL_OK")
</pallas_src>

<mosaic_0001>
module attributes {stable_mosaic.version = 11 : i64} {
  func.func @_conv1_gemm_kernel(%arg0: i32, %arg1: memref<256x32xbf16, #tpu.memory_space<vmem>>, %arg2: memref<32x8xbf16, #tpu.memory_space<vmem>>, %arg3: memref<1x8xf32, #tpu.memory_space<vmem>>, %arg4: memref<1x8xf32, #tpu.memory_space<vmem>>, %arg5: memref<256x8xbf16, #tpu.memory_space<vmem>>) attributes {dimension_semantics = [#tpu.dimension_semantics<parallel>], iteration_bounds = array<i64: 2>, scalar_prefetch = 0 : i64, scratch_operands = 0 : i64, tpu.core_type = #tpu.core_type<tc>, window_params = [{transform_indices = @transform_0, window_bounds = array<i64: 256, 32>}, {pipeline_mode = #tpu.pipeline_mode<synchronous>, transform_indices = @transform_1, window_bounds = array<i64: 32, 8>}, {pipeline_mode = #tpu.pipeline_mode<synchronous>, transform_indices = @transform_2, window_bounds = array<i64: 1, 8>}, {pipeline_mode = #tpu.pipeline_mode<synchronous>, transform_indices = @transform_3, window_bounds = array<i64: 1, 8>}, {transform_indices = @transform_4, window_bounds = array<i64: 256, 8>}]} {
    %c0 = arith.constant 0 : index
    %c0_0 = arith.constant 0 : index
    %0 = vector.load %arg1[%c0, %c0_0] : memref<256x32xbf16, #tpu.memory_space<vmem>>, vector<256x32xbf16>
    %c0_1 = arith.constant 0 : index
    %c0_2 = arith.constant 0 : index
    %1 = vector.load %arg2[%c0_1, %c0_2] : memref<32x8xbf16, #tpu.memory_space<vmem>>, vector<32x8xbf16>
    %cst = arith.constant dense<0.000000e+00> : vector<256x8xf32>
    %2 = tpu.matmul %0, %1, %cst {dimension_numbers = #tpu.dot_dimension_numbers<[1], [0], [0], [1], [0, 0, 1, 1], [], []>} : vector<256x32xbf16>, vector<32x8xbf16>, vector<256x8xf32> -> vector<256x8xf32>
    %c0_3 = arith.constant 0 : index
    %c0_4 = arith.constant 0 : index
    %3 = vector.load %arg3[%c0_3, %c0_4] : memref<1x8xf32, #tpu.memory_space<vmem>>, vector<1x8xf32>
    %4 = vector.broadcast %3 : vector<1x8xf32> to vector<256x8xf32>
    %5 = arith.mulf %2, %4 : vector<256x8xf32>
    %c0_5 = arith.constant 0 : index
    %c0_6 = arith.constant 0 : index
    %6 = vector.load %arg4[%c0_5, %c0_6] : memref<1x8xf32, #tpu.memory_space<vmem>>, vector<1x8xf32>
    %7 = vector.broadcast %6 : vector<1x8xf32> to vector<256x8xf32>
    %8 = arith.addf %5, %7 : vector<256x8xf32>
    %cst_7 = arith.constant 0.000000e+00 : f32
    %9 = vector.broadcast %cst_7 : f32 to vector<256x8xf32>
    %10 = arith.maximumf %8, %9 : vector<256x8xf32>
    %11 = arith.truncf %10 : vector<256x8xf32> to vector<256x8xbf16>
    %c0_8 = arith.constant 0 : index
    %c0_9 = arith.constant 0 : index
    %12 = vector.load %arg5[%c0_8, %c0_9] : memref<256x8xbf16, #tpu.memory_space<vmem>>, vector<256x8xbf16>
    tpu.vector_store %arg5[%c0_8, %c0_9], %11 {strides = array<i32>} : memref<256x8xbf16, #tpu.memory_space<vmem>>, vector<256x8xbf16>,
    return
  }
  func.func @transform_0(%arg0: i32) -> (i32, i32) {
    %c0_i32 = arith.constant 0 : i32
    %c0_i32_0 = arith.constant 0 : i32
    return %arg0, %c0_i32 : i32, i32
  }
  func.func @transform_1(%arg0: i32) -> (i32, i32) {
    %c0_i32 = arith.constant 0 : i32
    %c0_i32_0 = arith.constant 0 : i32
    %c0_i32_1 = arith.constant 0 : i32
    return %c0_i32, %c0_i32_0 : i32, i32
  }
  func.func @transform_2(%arg0: i32) -> (i32, i32) {
    %c0_i32 = arith.constant 0 : i32
    %c0_i32_0 = arith.constant 0 : i32
    %c0_i32_1 = arith.constant 0 : i32
    return %c0_i32, %c0_i32_0 : i32, i32
  }
  func.func @transform_3(%arg0: i32) -> (i32, i32) {
    %c0_i32 = arith.constant 0 : i32
    %c0_i32_0 = arith.constant 0 : i32
    %c0_i32_1 = arith.constant 0 : i32
    return %c0_i32, %c0_i32_0 : i32, i32
  }
  func.func @transform_4(%arg0: i32) -> (i32, i32) {
    %c0_i32 = arith.constant 0 : i32
    %c0_i32_0 = arith.constant 0 : i32
    return %arg0, %c0_i32 : i32, i32
  }
}

</mosaic_0001>

<bundles_post_ra>
// kernel: tpu_custom_call.1
= control target key start
LH: loop header
LB: loop body
LE: loop exit
PB: predicated region body
PF: predicated region fallthrough
CT: control target
= control target key end

     0   :  { %s1095_s15 = smov 0   ;;  %s1299_s0 = inlined_call_operand.vmem [shape: bf16[512,32], index: 0, kind: input, shape index: {}]   ;;  %s1300_s1 = inlined_call_operand.vmem [shape: bf16[32,8], index: 1, kind: input, shape index: {}]   ;;  %s1301_s2 = inlined_call_operand.vmem [shape: f32[1,8], index: 2, kind: input, shape index: {}]   ;;  %s1302_s3 = inlined_call_operand.vmem [shape: f32[1,8], index: 3, kind: input, shape index: {}]   ;;  %s1303_s4 = inlined_call_operand.vmem [shape: bf16[512,8], index: 4, kind: output, shape index: {}]  }
   0x1 LB: > { %s867_s16 = sadd.s32 4294967295, %s1068_s15   ;;  %p871_p0 = scmp.ge.s32.totalorder %s1068_s15, 1  ;;  %s1068_s15 = sphi %s1095_s15, %s14_s15  }
   0x2   : > { %p163_p1 = scmp.lt.s32.totalorder %s1068_s15, 3 }
   0x4   : > { %p164_p2 = pnand %p871_p0, %p163_p1 }
   0x5   : > { %v1044_v0 = vld [vmem:[%s1300_s1] sm:$0xff] (!%p164_p2)   ;;  %s872_s19 = sshll.u32 (!%p164_p2), %s867_s16, 5  ;;  %v1045_v1 = vld [vmem:[%s1300_s1 + $0x8] sm:$0xff] (!%p164_p2)   ;;  %vm330_vm0 = vcmask (!%p164_p2), 261120   ;;  %vm778_vm1 = vcmask (!%p164_p2), 60416  }
   0x6   : > { %167 = sbr.rel (%p164_p2) target bundleno = 269 (0x10d), region = 36  ;;  %p190_p3 = scmp.lt.s32.totalorder (!%p164_p2), %s872_s19, 63  ;;  %996 = vmatprep.subr.bf16.mxu0 (!%p164_p2), %v1044_v0  ;;  %1032 = vmatprep.subr.bf16.mxu1 (!%p164_p2), %v1044_v0  ;;  %v1154_v18 = vld [vmem:[%s1301_s2] ss:$0 sm:$0xff] (!%p164_p2) }
   0x7   : > { %997 = vmatpush3.bf16.msra.mxu0 (!%p164_p2), %v1044_v0  ;;  %1034 = vmatpush3.bf16.msra.mxu1 (!%p164_p2), %v1044_v0  ;;  %v1159_v20 = vld [vmem:[%s1302_s3] ss:$0 sm:$0xff] (!%p164_p2) }
   0x8   : > { %998 = vmatprep.subr.bf16.mxu0 (!%p164_p2), %v1045_v1  ;;  %1033 = vmatprep.subr.bf16.mxu1 (!%p164_p2), %v1045_v1 }
   0xb   : > { %999 = vmatpush3.bf16.msra.mxu0 (!%p164_p2), %v1045_v1  ;;  %1035 = vmatpush3.bf16.msra.mxu1 (!%p164_p2), %v1045_v1 }
   0xd   : > { %s1305_s19 = smov (!%p190_p3, %s872_s19), 63 }
   0xe   : > { %s873_s22 = sshll.u32 %s1305_s19, 2 }
   0xf   : > { %s1117_s25 = scalar_lea.vmem %s1299_s0, %s873_s22  ;;  %s1179_s6 = scalar_lea.vmem %s1303_s4, %s873_s22 }
  0x10   : > { %v1046_v2 = vld [vmem:[%s1117_s25] sm:$0xff]   ;;  %v1048_v4 = vld [vmem:[%s1117_s25 + $0x8] sm:$0xff]   ;;  %v1050_v6 = vld [vmem:[%s1117_s25 + $0x10] sm:$0xff]  }
  0x11   : > { %v1047_v3 = vld [vmem:[%s1117_s25 + $0x40] sm:$0xff]   ;;  %1000 = vmatprep.mubr.msk.bf16.mxu0 %vm330_vm0, %v1046_v2  ;;  %v1049_v5 = vld [vmem:[%s1117_s25 + $0x48] sm:$0xff]   ;;  %v1051_v7 = vld [vmem:[%s1117_s25 + $0x50] sm:$0xff]  }
  0x12   : > { %1016 = vmatprep.mubr.msk.bf16.mxu1 %vm330_vm0, %v1047_v3  ;;  %1001 = vmatmul.mubr.msk.bf16.vlgmr.msra.gmra.mrb[0].mxu0 %vm330_vm0, %v1048_v4  ;;  %v1052_v8 = vld [vmem:[%s1117_s25 + $0x18] sm:$0xff]   ;;  %v1054_v10 = vld [vmem:[%s1117_s25 + $0x20] sm:$0xff]   ;;  %v1056_v12 = vld [vmem:[%s1117_s25 + $0x28] sm:$0xff]  }
  0x13   : > { %1017 = vmatmul.mubr.msk.bf16.vlgmr.msra.gmra.mrb[0].mxu1 %vm330_vm0, %v1049_v5  ;;  %1004 = vmatprep.mubr.msk.bf16.mxu0 %vm330_vm0, %v1050_v6  ;;  %v1053_v9 = vld [vmem:[%s1117_s25 + $0x58] sm:$0xff]   ;;  %v1055_v11 = vld [vmem:[%s1117_s25 + $0x60] sm:$0xff]   ;;  %v1057_v13 = vld [vmem:[%s1117_s25 + $0x68] sm:$0xff]  }
  0x14   : > { %1020 = vmatprep.mubr.msk.bf16.mxu1 %vm330_vm0, %v1051_v7  ;;  %v1058_v14 = vld [vmem:[%s1117_s25 + $0x30] sm:$0xff]   ;;  %v1060_v16 = vld [vmem:[%s1117_s25 + $0x38] sm:$0xff]  }
  0x15   : > { %v1059_v15 = vld [vmem:[%s1117_s25 + $0x70] sm:$0xff]   ;;  %v1061_v17 = vld [vmem:[%s1117_s25 + $0x78] sm:$0xff]  }
  0x1a   : > { %1005 = vmatmul.mubr.msk.bf16.gmra.mrb[4].mxu0 %vm330_vm0, %v1052_v8 }
  0x1b   : > { %1021 = vmatmul.mubr.msk.bf16.gmra.mrb[4].mxu1 %vm330_vm0, %v1053_v9  ;;  %1008 = vmatprep.mubr.msk.bf16.mxu0 %vm330_vm0, %v1054_v10 }
  0x1c   : > { %1024 = vmatprep.mubr.msk.bf16.mxu1 %vm330_vm0, %v1055_v11 }
  0x22   : > { %1009 = vmatmul.mubr.msk.bf16.gmra.mrb[8].mxu0 %vm330_vm0, %v1056_v12 }
  0x23   : > { %1025 = vmatmul.mubr.msk.bf16.gmra.mrb[8].mxu1 %vm330_vm0, %v1057_v13  ;;  %1012 = vmatprep.mubr.msk.bf16.mxu0 %vm330_vm0, %v1058_v14 }
  0x24   : > { %1028 = vmatprep.mubr.msk.bf16.mxu1 %vm330_vm0, %v1059_v15 }
  0x2a   : > { %1013 = vmatmul.mubr.msk.bf16.gmra.mrb[12].mxu0 %vm330_vm0, %v1060_v16 }
  0x2b   : > { %1029 = vmatmul.mubr.msk.bf16.gmra.mrb[12].mxu1 %vm330_vm0, %v1061_v17 }
  0xe5   : > { %v1002_v19 = vpop.f32.mrb[0].mxu0 }
  0xe6   : > { %v549_v21 = vmul.f32 %v1002_v19, %v1154_v18  ;;  %v1018_v22 = vpop.f32.mrb[0].mxu1  ;;  %v413_v23 = vpop.f32.mrb[1].mxu0 }
  0xe7   : > { %v565_v24 = vmul.f32 %v1018_v22, %v1154_v18  ;;  %v547_v25 = vmul.f32 %v1154_v18, %v413_v23  ;;  %v477_v26 = vpop.f32.mrb[1].mxu1  ;;  %v1003_v27 = vpop.f32.mrb[2].mxu0 }
  0xe8   : > { %v588_v28 = vadd.f32 %v1159_v20, %v549_v21  ;;  %v563_v29 = vmul.f32 %v1154_v18, %v477_v26  ;;  %v550_v30 = vmul.f32 %v1003_v27, %v1154_v18  ;;  %v1019_v31 = vpop.f32.mrb[2].mxu1  ;;  %v416_v32 = vpop.f32.mrb[3].mxu0 }
  0xe9   : > { %v604_v33 = vadd.f32 %v1159_v20, %v565_v24  ;;  %v586_v34 = vadd.f32 %v1159_v20, %v547_v25  ;;  %v566_v35 = vmul.f32 %v1019_v31, %v1154_v18  ;;  %v548_v36 = vmul.f32 %v1154_v18, %v416_v32  ;;  %v480_v37 = vpop.f32.mrb[3].mxu1 }
  0xea   : > { %v620_v38 = vmax.f32 %v588_v28, 0.0  ;;  %v602_v39 = vadd.f32 %v1159_v20, %v563_v29  ;;  %v589_v40 = vadd.f32 %v1159_v20, %v550_v30  ;;  %v564_v41 = vmul.f32 %v1154_v18, %v480_v37 }
  0xeb   : > { %v636_v42 = vmax.f32 %v604_v33, 0.0  ;;  %v618_v43 = vmax.f32 %v586_v34, 0.0  ;;  %v605_v44 = vadd.f32 %v1159_v20, %v566_v35  ;;  %v587_v45 = vadd.f32 %v1159_v20, %v548_v36 }
  0xec   : > { %v948_v46 = vpack.c.bf16 %v620_v38, %v620_v38  ;;  %v634_v47 = vmax.f32 %v602_v39, 0.0  ;;  %v621_v48 = vmax.f32 %v589_v40, 0.0  ;;  %v603_v49 = vadd.f32 %v1159_v20, %v564_v41 }
  0xed   : > { %v964_v50 = vpack.c.bf16 %v636_v42, %v636_v42  ;;  %v946_v51 = vpack.c.bf16 %v618_v43, %v618_v43  ;;  %v637_v52 = vmax.f32 %v605_v44, 0.0  ;;  %v619_v53 = vmax.f32 %v587_v45, 0.0  ;;  %v1006_v54 = vpop.f32.mrb[4].mxu0 }
  0xee   : > { %781 = vst.msk [vmem:[%s1179_s6 + $0x8] sm:$0xf] %vm778_vm1, %v948_v46  ;;  %v962_v55 = vpack.c.bf16 %v634_v47, %v634_v47  ;;  %v949_v56 = vpack.c.bf16 %v621_v48, %v621_v48  ;;  %v635_v57 = vmax.f32 %v603_v49, 0.0  ;;  %v553_v58 = vmul.f32 %v1006_v54, %v1154_v18  ;;  %v1022_v59 = vpop.f32.mrb[4].mxu1  ;;  %v429_v60 = vpop.f32.mrb[5].mxu0 }
  0xef   : > { %797 = vst.msk [vmem:[%s1179_s6 + $0x48] sm:$0xf] %vm778_vm1, %v964_v50  ;;  %779 = vst.msk [vmem:[%s1179_s6] sm:$0xf] %vm778_vm1, %v946_v51  ;;  %v965_v61 = vpack.c.bf16 %v637_v52, %v637_v52  ;;  %v947_v62 = vpack.c.bf16 %v619_v53, %v619_v53  ;;  %v569_v63 = vmul.f32 %v1022_v59, %v1154_v18  ;;  %v493_v1 = vpop.f32.mrb[5].mxu1  ;;  %v1007_v2 = vpop.f32.mrb[6].mxu0 }
  0xf0   : > { %v551_v0 = vmul.f32 %v1154_v18, %v429_v60  ;;  %795 = vst.msk [vmem:[%s1179_s6 + $0x40] sm:$0xf] %vm778_vm1, %v962_v55  ;;  %782 = vst.msk [vmem:[%s1179_s6 + $0xc] sm:$0xf] %vm778_vm1, %v949_v56  ;;  %v963_v3 = vpack.c.bf16 %v635_v57, %v635_v57  ;;  %v592_v4 = vadd.f32 %v1159_v20, %v553_v58  ;;  %v1023_v7 = vpop.f32.mrb[6].mxu1  ;;  %v432_v8 = vpop.f32.mrb[7].mxu0 }
  0xf1   : > { %v567_v5 = vmul.f32 %v1154_v18, %v493_v1  ;;  %v554_v6 = vmul.f32 %v1007_v2, %v1154_v18  ;;  %798 = vst.msk [vmem:[%s1179_s6 + $0x4c] sm:$0xf] %vm778_vm1, %v965_v61  ;;  %780 = vst.msk [vmem:[%s1179_s6 + $0x4] sm:$0xf] %vm778_vm1, %v947_v62  ;;  %v608_v9 = vadd.f32 %v1159_v20, %v569_v63  ;;  %v496_v13 = vpop.f32.mrb[7].mxu1 }
  0xf2   : > { %v590_v10 = vadd.f32 %v1159_v20, %v551_v0  ;;  %v570_v11 = vmul.f32 %v1023_v7, %v1154_v18  ;;  %v552_v12 = vmul.f32 %v1154_v18, %v432_v8  ;;  %796 = vst.msk [vmem:[%s1179_s6 + $0x44] sm:$0xf] %vm778_vm1, %v963_v3  ;;  %v624_v14 = vmax.f32 %v592_v4, 0.0 }
  0xf3   : > { %v606_v15 = vadd.f32 %v1159_v20, %v567_v5  ;;  %v593_v16 = vadd.f32 %v1159_v20, %v554_v6  ;;  %v568_v17 = vmul.f32 %v1154_v18, %v496_v13  ;;  %v640_v19 = vmax.f32 %v608_v9, 0.0 }
  0xf4   : > { %v622_v21 = vmax.f32 %v590_v10, 0.0  ;;  %v609_v22 = vadd.f32 %v1159_v20, %v570_v11  ;;  %v591_v23 = vadd.f32 %v1159_v20, %v552_v12  ;;  %v952_v24 = vpack.c.bf16 %v624_v14, %v624_v14 }
  0xf5   : > { %v638_v25 = vmax.f32 %v606_v15, 0.0  ;;  %v625_v26 = vmax.f32 %v593_v16, 0.0  ;;  %v607_v27 = vadd.f32 %v1159_v20, %v568_v17  ;;  %v968_v28 = vpack.c.bf16 %v640_v19, %v640_v19  ;;  %v1010_v32 = vpop.f32.mrb[8].mxu0 }
  0xf6   : > { %v950_v29 = vpack.c.bf16 %v622_v21, %v622_v21  ;;  %v641_v30 = vmax.f32 %v609_v22, 0.0  ;;  %v623_v31 = vmax.f32 %v591_v23, 0.0  ;;  %785 = vst.msk [vmem:[%s1179_s6 + $0x18] sm:$0xf] %vm778_vm1, %v952_v24  ;;  %v557_v36 = vmul.f32 %v1010_v32, %v1154_v18  ;;  %v1026_v37 = vpop.f32.mrb[8].mxu1  ;;  %v445_v38 = vpop.f32.mrb[9].mxu0 }
  0xf7   : > { %v966_v33 = vpack.c.bf16 %v638_v25, %v638_v25  ;;  %v953_v34 = vpack.c.bf16 %v625_v26, %v625_v26  ;;  %v639_v35 = vmax.f32 %v607_v27, 0.0  ;;  %801 = vst.msk [vmem:[%s1179_s6 + $0x58] sm:$0xf] %vm778_vm1, %v968_v28  ;;  %v573_v41 = vmul.f32 %v1026_v37, %v1154_v18  ;;  %v509_v43 = vpop.f32.mrb[9].mxu1  ;;  %v1011_v44 = vpop.f32.mrb[10].mxu0 }
  0xf8   : > { %783 = vst.msk [vmem:[%s1179_s6 + $0x10] sm:$0xf] %vm778_vm1, %v950_v29  ;;  %v969_v39 = vpack.c.bf16 %v641_v30, %v641_v30  ;;  %v951_v40 = vpack.c.bf16 %v623_v31, %v623_v31  ;;  %v555_v42 = vmul.f32 %v1154_v18, %v445_v38  ;;  %v596_v46 = vadd.f32 %v1159_v20, %v557_v36  ;;  %v1027_v49 = vpop.f32.mrb[10].mxu1  ;;  %v448_v50 = vpop.f32.mrb[11].mxu0 }
  0xf9   : > { %799 = vst.msk [vmem:[%s1179_s6 + $0x50] sm:$0xf] %vm778_vm1, %v966_v33  ;;  %786 = vst.msk [vmem:[%s1179_s6 + $0x1c] sm:$0xf] %vm778_vm1, %v953_v34  ;;  %v967_v45 = vpack.c.bf16 %v639_v35, %v639_v35  ;;  %v571_v47 = vmul.f32 %v1154_v18, %v509_v43  ;;  %v558_v48 = vmul.f32 %v1011_v44, %v1154_v18  ;;  %v512_v55 = vpop.f32.mrb[11].mxu1 }
  0xfa   : > { %802 = vst.msk [vmem:[%s1179_s6 + $0x5c] sm:$0xf] %vm778_vm1, %v969_v39  ;;  %784 = vst.msk [vmem:[%s1179_s6 + $0x14] sm:$0xf] %vm778_vm1, %v951_v40  ;;  %v612_v51 = vadd.f32 %v1159_v20, %v573_v41  ;;  %v594_v52 = vadd.f32 %v1159_v20, %v555_v42  ;;  %v574_v53 = vmul.f32 %v1027_v49, %v1154_v18  ;;  %v628_v56 = vmax.f32 %v596_v46, 0.0 }
  0xfb   : > { %v556_v54 = vmul.f32 %v1154_v18, %v448_v50  ;;  %800 = vst.msk [vmem:[%s1179_s6 + $0x54] sm:$0xf] %vm778_vm1, %v967_v45  ;;  %v610_v57 = vadd.f32 %v1159_v20, %v571_v47  ;;  %v597_v58 = vadd.f32 %v1159_v20, %v558_v48  ;;  %v572_v59 = vmul.f32 %v1154_v18, %v512_v55 }
  0xfc   : > { %v644_v60 = vmax.f32 %v612_v51, 0.0  ;;  %v626_v61 = vmax.f32 %v594_v52, 0.0  ;;  %v613_v62 = vadd.f32 %v1159_v20, %v574_v53  ;;  %v956_v0 = vpack.c.bf16 %v628_v56, %v628_v56 }
  0xfd   : > { %v595_v63 = vadd.f32 %v1159_v20, %v556_v54  ;;  %v642_v1 = vmax.f32 %v610_v57, 0.0  ;;  %v629_v2 = vmax.f32 %v597_v58, 0.0  ;;  %v611_v3 = vadd.f32 %v1159_v20, %v572_v59  ;;  %v1014_v8 = vpop.f32.mrb[12].mxu0 }
  0xfe   : > { %v972_v4 = vpack.c.bf16 %v644_v60, %v644_v60  ;;  %v954_v5 = vpack.c.bf16 %v626_v61, %v626_v61  ;;  %v645_v6 = vmax.f32 %v613_v62, 0.0  ;;  %789 = vst.msk [vmem:[%s1179_s6 + $0x28] sm:$0xf] %vm778_vm1, %v956_v0  ;;  %v561_v12 = vmul.f32 %v1014_v8, %v1154_v18  ;;  %v1030_v13 = vpop.f32.mrb[12].mxu1  ;;  %v461_v14 = vpop.f32.mrb[13].mxu0 }
  0xff   : > { %v627_v7 = vmax.f32 %v595_v63, 0.0  ;;  %v970_v9 = vpack.c.bf16 %v642_v1, %v642_v1  ;;  %v957_v10 = vpack.c.bf16 %v629_v2, %v629_v2  ;;  %v643_v11 = vmax.f32 %v611_v3, 0.0  ;;  %v525_v21 = vpop.f32.mrb[13].mxu1  ;;  %v1015_v22 = vpop.f32.mrb[14].mxu0 }
 0x100   : > { %805 = vst.msk [vmem:[%s1179_s6 + $0x68] sm:$0xf] %vm778_vm1, %v972_v4  ;;  %787 = vst.msk [vmem:[%s1179_s6 + $0x20] sm:$0xf] %vm778_vm1, %v954_v5  ;;  %v973_v15 = vpack.c.bf16 %v645_v6, %v645_v6  ;;  %v577_v17 = vmul.f32 %v1030_v13, %v1154_v18  ;;  %v559_v19 = vmul.f32 %v1154_v18, %v461_v14  ;;  %v1031_v27 = vpop.f32.mrb[14].mxu1  ;;  %v464_v28 = vpop.f32.mrb[15].mxu0 }
 0x101   : > { %v955_v16 = vpack.c.bf16 %v627_v7, %v627_v7  ;;  %803 = vst.msk [vmem:[%s1179_s6 + $0x60] sm:$0xf] %vm778_vm1, %v970_v9  ;;  %790 = vst.msk [vmem:[%s1179_s6 + $0x2c] sm:$0xf] %vm778_vm1, %v957_v10  ;;  %v971_v23 = vpack.c.bf16 %v643_v11, %v643_v11  ;;  %v600_v24 = vadd.f32 %v1159_v20, %v561_v12  ;;  %v528_v33 = vpop.f32.mrb[15].mxu1 }
 0x102   : > { %v575_v25 = vmul.f32 %v1154_v18, %v525_v21  ;;  %v562_v26 = vmul.f32 %v1015_v22, %v1154_v18  ;;  %806 = vst.msk [vmem:[%s1179_s6 + $0x6c] sm:$0xf] %vm778_vm1, %v973_v15  ;;  %v616_v29 = vadd.f32 %v1159_v20, %v577_v17  ;;  %v598_v30 = vadd.f32 %v1159_v20, %v559_v19 }
 0x103   : > { %788 = vst.msk [vmem:[%s1179_s6 + $0x24] sm:$0xf] %vm778_vm1, %v955_v16  ;;  %v578_v31 = vmul.f32 %v1031_v27, %v1154_v18  ;;  %v560_v32 = vmul.f32 %v1154_v18, %v464_v28  ;;  %804 = vst.msk [vmem:[%s1179_s6 + $0x64] sm:$0xf] %vm778_vm1, %v971_v23  ;;  %v632_v34 = vmax.f32 %v600_v24, 0.0  ;;  %v576_v37 = vmul.f32 %v1154_v18, %v528_v33 }
 0x104   : > { %v614_v35 = vadd.f32 %v1159_v20, %v575_v25  ;;  %v601_v36 = vadd.f32 %v1159_v20, %v562_v26  ;;  %v648_v38 = vmax.f32 %v616_v29, 0.0  ;;  %v630_v39 = vmax.f32 %v598_v30, 0.0 }
 0x105   : > { %v617_v40 = vadd.f32 %v1159_v20, %v578_v31  ;;  %v599_v41 = vadd.f32 %v1159_v20, %v560_v32  ;;  %v960_v42 = vpack.c.bf16 %v632_v34, %v632_v34  ;;  %v615_v45 = vadd.f32 %v1159_v20, %v576_v37 }
 0x106   : > { %v646_v43 = vmax.f32 %v614_v35, 0.0  ;;  %v633_v44 = vmax.f32 %v601_v36, 0.0  ;;  %v976_v46 = vpack.c.bf16 %v648_v38, %v648_v38  ;;  %v958_v47 = vpack.c.bf16 %v630_v39, %v630_v39 }
 0x107   : > { %v649_v18 = vmax.f32 %v617_v40, 0.0  ;;  %v631_v48 = vmax.f32 %v599_v41, 0.0  ;;  %793 = vst.msk [vmem:[%s1179_s6 + $0x38] sm:$0xf] %vm778_vm1, %v960_v42  ;;  %v647_v51 = vmax.f32 %v615_v45, 0.0 }
 0x108   : > { %v974_v49 = vpack.c.bf16 %v646_v43, %v646_v43  ;;  %v961_v50 = vpack.c.bf16 %v633_v44, %v633_v44  ;;  %809 = vst.msk [vmem:[%s1179_s6 + $0x78] sm:$0xf] %vm778_vm1, %v976_v46  ;;  %791 = vst.msk [vmem:[%s1179_s6 + $0x30] sm:$0xf] %vm778_vm1, %v958_v47 }
 0x109   : > { %v977_v52 = vpack.c.bf16 %v649_v18, %v649_v18  ;;  %v959_v53 = vpack.c.bf16 %v631_v48, %v631_v48  ;;  %v975_v20 = vpack.c.bf16 %v647_v51, %v647_v51 }
 0x10a   : > { %807 = vst.msk [vmem:[%s1179_s6 + $0x70] sm:$0xf] %vm778_vm1, %v974_v49  ;;  %794 = vst.msk [vmem:[%s1179_s6 + $0x3c] sm:$0xf] %vm778_vm1, %v961_v50 }
 0x10b   : > { %810 = vst.msk [vmem:[%s1179_s6 + $0x7c] sm:$0xf] %vm778_vm1, %v977_v52  ;;  %792 = vst.msk [vmem:[%s1179_s6 + $0x34] sm:$0xf] %vm778_vm1, %v959_v53 }
 0x10c   : > { %808 = vst.msk [vmem:[%s1179_s6 + $0x74] sm:$0xf] %vm778_vm1, %v975_v20 }
 0x10d PF: > { %s14_s15 = sadd.s32 1, %s1068_s15  }
 0x10e   : > { %p11_p4 = scmp.ge.s32.totalorder %s14_s15, 4  }
 0x110   :  { %13 = sbr.rel (!%p11_p4) target bundleno = 1 (0x1), region = 66 }

</bundles_post_ra>
